<compile_context>
chip_gen: v5e
topology: v5e:2x2
jax: 0.10.0
libtpu: 0.0.40
codegen_flags: <defaults>
</compile_context>

<pallas_src>
import math

import jax
import jax.numpy as jnp
from jax.experimental import pallas as pl
from jax.experimental.pallas import tpu as pltpu


# --------------------------------------------------------------------------- #
# Kernel
# --------------------------------------------------------------------------- #
def _gated_trans_kernel(x_ref, w_ref, b_ref, o_ref):
    """One (tm, in_dim) x-tile against one fused (in_dim, 2*tn) weight tile.

    Columns [0:tn] of the fused tile/bias are the tanh branch, [tn:2*tn] the
    LeakyReLU branch for the same tn output columns.
    """
    tn = o_ref.shape[-1]
    # Cast x to the weight compute dtype in-kernel (no wrapper HBM pass),
    # then a single fused MXU matmul with f32 accumulation.
    xc = x_ref[...].astype(w_ref.dtype)
    pre = jnp.dot(xc, w_ref[...], preferred_element_type=jnp.float32)
    pre = pre + b_ref[...]                       # bias add in f32
    x_y = jnp.tanh(pre[:, :tn])                  # EUP
    g = pre[:, tn:]
    x_g = jnp.maximum(g, 0.01 * g)               # LeakyReLU (PyTorch default slope)
    o_ref[...] = (x_y * x_g).astype(o_ref.dtype)


# --------------------------------------------------------------------------- #
# Helpers
# --------------------------------------------------------------------------- #
def _round_up(x, m):
    return ((x + m - 1) // m) * m


def _cdiv(a, b):
    return -(-a // b)


def _vmem_capacity_bytes():
    """Physical VMEM per TensorCore; conservative fallback (v7x = 64 MiB)."""
    try:
        info = pltpu.get_tpu_info()
        cap = getattr(info, "vmem_capacity_bytes", None)
        if cap:
            return int(cap)
    except Exception:
        pass
    return 64 << 20


def _pick_tn(in_dim, out_dim, w_itemsize, vmem_cap):
    """Largest lane-aligned divisor of out_dim whose tile footprint fits budget."""
    if out_dim % 128 != 0:
        return out_dim                       # not lane-aligned: single full-width tile
    budget = int(0.35 * vmem_cap)            # leave headroom for the pipeline
    tm_nom = 256
    c = out_dim
    while c >= 128:
        if out_dim % c == 0:
            foot = (2 * tm_nom * in_dim * 4            # x tile (f32), double-buffered
                    + 2 * in_dim * 2 * c * w_itemsize  # fused [Wy|Wg] tile
                    + 2 * 2 * c * 4                    # fused bias tile
                    + 2 * tm_nom * c * 4               # out tile
                    + 2 * tm_nom * 2 * c * 4)          # f32 matmul/bias intermediates
            if foot <= budget:
                return c
        c -= 128
    return 128


# --------------------------------------------------------------------------- #
# Parameter construction (one-time; NOT on the per-call path)
# --------------------------------------------------------------------------- #
def init_gated_trans_params(key, in_dim, out_dim, dtype=jnp.float32):
    """kaiming_uniform_ (fan_in, leaky_relu gain=sqrt(2)), biases zero.
    Weights stored as (in_dim, out_dim) (pre-transposed vs. nn.Linear)."""
    ky, kg = jax.random.split(key)
    bound = math.sqrt(2.0) * math.sqrt(3.0 / in_dim)
    wy = jax.random.uniform(ky, (in_dim, out_dim), dtype, -bound, bound)
    wg = jax.random.uniform(kg, (in_dim, out_dim), dtype, -bound, bound)
    by = jnp.zeros((1, out_dim), dtype)
    bg = jnp.zeros((1, out_dim), dtype)
    return wy, by, wg, bg


def fuse_gated_trans_params(wy, by, wg, bg, *, tn=None, compute_dtype=jnp.bfloat16):
    """Build the fused, MXU-ready [Wy | Wg] layout ONCE (call at init, not per step).

    Returns (w_fused, b_fused, tn):
      w_fused: (in_dim, 2*out_dim) in compute_dtype, per-tn-tile [y|g] interleave
      b_fused: (1, 2*out_dim) f32, same interleave
      tn:      static output-column tile size chosen from the VMEM budget
    """
    in_dim, out_dim = wy.shape
    w_itemsize = jnp.dtype(compute_dtype).itemsize
    if tn is None:
        tn = _pick_tn(in_dim, out_dim, w_itemsize, _vmem_capacity_bytes())
    assert out_dim % tn == 0, "tn must divide out_dim"
    n_n = out_dim // tn

    wy3 = wy.reshape(in_dim, n_n, tn)
    wg3 = wg.reshape(in_dim, n_n, tn)
    w_fused = jnp.concatenate([wy3, wg3], axis=-1).reshape(in_dim, 2 * out_dim)
    w_fused = w_fused.astype(compute_dtype)

    by3 = jnp.asarray(by).reshape(1, n_n, tn)
    bg3 = jnp.asarray(bg).reshape(1, n_n, tn)
    b_fused = jnp.concatenate([by3, bg3], axis=-1).reshape(1, 2 * out_dim)
    b_fused = b_fused.astype(jnp.float32)          # bias stays f32
    return w_fused, b_fused, int(tn)


# --------------------------------------------------------------------------- #
# Forward
# --------------------------------------------------------------------------- #
def gated_trans(x, w_fused, b_fused, tn, *, tm=None, out_dtype=None):
    """x: [..., in_dim]; (w_fused, b_fused, tn) from fuse_gated_trans_params()."""
    in_dim = x.shape[-1]
    two_out = w_fused.shape[-1]
    out_dim = two_out // 2
    assert w_fused.shape[0] == in_dim and out_dim % tn == 0
    lead_shape = x.shape[:-1]
    out_dtype = x.dtype if out_dtype is None else out_dtype

    x2 = x.reshape(-1, in_dim)                 # no pad, no cast: zero wrapper HBM passes
    M = x2.shape[0]
    n_n = out_dim // tn

    # ---- row tile: 128-aligned (bf16 MXU tile), default 256 ----------------
    if tm is None:
        tm = min(256, _round_up(max(M, 1), 128))
        # v7x megacore: avoid a 1x1 grid when we can split along M and stay aligned.
        if n_n == 1 and _cdiv(M, tm) == 1 and M > 128:
            tm = 128
    n_m = _cdiv(M, tm)                         # ragged edge block handled by Pallas masking

    # ---- operand residency: resident = larger operand (indexed by OUTER axis)
    x_bytes = M * in_dim * jnp.dtype(x.dtype).itemsize
    w_sz = jnp.dtype(w_fused.dtype).itemsize
    w_bytes = in_dim * two_out * w_sz
    n_outer = w_bytes >= x_bytes               # True: W resident, x streams (small-M case)

    if n_outer:
        grid = (n_n, n_m)
        x_map = lambda j, i: (i, 0)
        w_map = lambda j, i: (0, j)
        o_map = lambda j, i: (i, j)
    else:
        grid = (n_m, n_n)
        x_map = lambda i, j: (i, 0)
        w_map = lambda i, j: (0, j)
        o_map = lambda i, j: (i, j)

    # ---- explicit VMEM budget (v5e 16 MiB scoped default / v7x 64 MiB total)
    out_sz = jnp.dtype(out_dtype).itemsize
    foot = (2 * tm * in_dim * jnp.dtype(x.dtype).itemsize
            + 2 * in_dim * 2 * tn * w_sz
            + 2 * 2 * tn * 4
            + 2 * tm * tn * out_sz
            + 2 * tm * 2 * tn * 4)
    vmem_cap = _vmem_capacity_bytes()
    vmem_limit = int(min(vmem_cap, max(32 << 20, foot + (8 << 20))))

    # ---- advisory cost hint (accounts for re-streaming of the non-resident operand)
    x_reads = n_n if n_outer else 1
    w_reads = 1 if n_outer else n_m
    cost = pl.CostEstimate(
        flops=2 * M * in_dim * 2 * out_dim,
        transcendentals=M * out_dim,
        bytes_accessed=(x_reads * x_bytes
                        + w_reads * (w_bytes + two_out * 4)
                        + M * out_dim * out_sz),
    )

    # TODO: if xprof ever shows exposed x/out DMA on tiny in_dim, add
    # pipeline_mode=pl.Buffered(3) to the x/out BlockSpecs (measure first).
    out = pl.pallas_call(
        _gated_trans_kernel,
        out_shape=jax.ShapeDtypeStruct((M, out_dim), out_dtype),
        grid_spec=pltpu.PrefetchScalarGridSpec(
            num_scalar_prefetch=0,
            grid=grid,
            in_specs=[
                pl.BlockSpec((tm, in_dim), x_map),        # x row tile (f32, cast in-kernel)
                pl.BlockSpec((in_dim, 2 * tn), w_map),    # fused [Wy|Wg] tile
                pl.BlockSpec((1, 2 * tn), w_map),         # fused bias tile
            ],
            out_specs=pl.BlockSpec((tm, tn), o_map),
        ),
        compiler_params=pltpu.CompilerParams(
            dimension_semantics=("parallel", "parallel"),
            vmem_limit_bytes=vmem_limit),
        cost_estimate=cost,
    )(x2, w_fused, b_fused)

    return out.reshape(*lead_shape, out_dim)


# --------------------------------------------------------------------------- #
# Pure-JAX reference (raw, unfused weights)
# --------------------------------------------------------------------------- #
def gated_trans_ref(x, wy, by, wg, bg, compute_dtype=jnp.float32):
    xc = x.astype(compute_dtype)
    y_pre = jnp.dot(xc, wy.astype(compute_dtype),
                    preferred_element_type=jnp.float32) + by.reshape(-1)
    g_pre = jnp.dot(xc, wg.astype(compute_dtype),
                    preferred_element_type=jnp.float32) + bg.reshape(-1)
    return jnp.tanh(y_pre) * jnp.where(g_pre >= 0.0, g_pre, 0.01 * g_pre)


# --------------------------------------------------------------------------- #
if __name__ == "__main__":
    key = jax.random.PRNGKey(0)
    k1, k2, k3, k4, k5, k6 = jax.random.split(key, 6)

    # Case 1: small lane-dense shapes; single grid step, weights resident.
    b1, s1, din1, dout1 = 2, 8, 128, 128
    x1 = jax.random.normal(k1, (b1, s1, din1), jnp.float32)
    raw1 = init_gated_trans_params(k2, din1, dout1)
    wf1, bf1, tn1 = fuse_gated_trans_params(*raw1)          # one-time fusion
    out1 = jax.block_until_ready(gated_trans(x1, wf1, bf1, tn1))
    assert out1.shape == (b1, s1, dout1)
    ref1_bf16 = gated_trans_ref(x1, *raw1, compute_dtype=jnp.bfloat16)
    assert jnp.allclose(out1, ref1_bf16, atol=1e-2, rtol=1e-2), "mismatch (bf16 ref)"
    ref1_f32 = gated_trans_ref(x1, *raw1)
    assert jnp.allclose(out1, ref1_f32, atol=0.12, rtol=0.12), "mismatch (f32 ref)"

    # Case 2: ragged M (21 rows, edge-block masking, no pad copy) + tn=128 -> 2 N tiles.
    b2, s2, din2, dout2 = 3, 7, 256, 256
    x2 = jax.random.normal(k3, (b2, s2, din2), jnp.float32)
    raw2 = init_gated_trans_params(k4, din2, dout2)
    wf2, bf2, tn2 = fuse_gated_trans_params(*raw2, tn=128)
    out2 = jax.block_until_ready(gated_trans(x2, wf2, bf2, tn2))
    assert out2.shape == (b2, s2, dout2)
    ref2_bf16 = gated_trans_ref(x2, *raw2, compute_dtype=jnp.bfloat16)
    assert jnp.allclose(out2, ref2_bf16, atol=1e-2, rtol=1e-2), "mismatch (bf16 ref, tiled)"

    # Case 3: larger M (512 rows) -> x becomes the resident operand (M-outer grid),
    #         two row tiles so both v7x TensorCores get work.
    b3, s3, din3, dout3 = 4, 128, 128, 128
    x3 = jax.random.normal(k5, (b3, s3, din3), jnp.float32)
    raw3 = init_gated_trans_params(k6, din3, dout3)
    wf3, bf3, tn3 = fuse_gated_trans_params(*raw3)
    out3 = jax.block_until_ready(gated_trans(x3, wf3, bf3, tn3))
    assert out3.shape == (b3, s3, dout3)
    ref3_bf16 = gated_trans_ref(x3, *raw3, compute_dtype=jnp.bfloat16)
    assert jnp.allclose(out3, ref3_bf16, atol=1e-2, rtol=1e-2), "mismatch (bf16 ref, M-outer)"

    print("KERNEL_OK")
</pallas_src>

<mosaic_0001>
module attributes {stable_mosaic.version = 11 : i64} {
  func.func @_gated_trans_kernel(%arg0: i32, %arg1: i32, %arg2: memref<128x128xf32, #tpu.memory_space<vmem>>, %arg3: memref<128x256xbf16, #tpu.memory_space<vmem>>, %arg4: memref<1x256xf32, #tpu.memory_space<vmem>>, %arg5: memref<128x128xf32, #tpu.memory_space<vmem>>) attributes {dimension_semantics = [#tpu.dimension_semantics<parallel>, #tpu.dimension_semantics<parallel>], iteration_bounds = array<i64: 1, 1>, scalar_prefetch = 0 : i64, scratch_operands = 0 : i64, tpu.core_type = #tpu.core_type<tc>, window_params = [{transform_indices = @transform_0, window_bounds = array<i64: 128, 128>}, {transform_indices = @transform_1, window_bounds = array<i64: 128, 256>}, {transform_indices = @transform_2, window_bounds = array<i64: 1, 256>}, {transform_indices = @transform_3, window_bounds = array<i64: 128, 128>}]} {
    %c0 = arith.constant 0 : index
    %c0_0 = arith.constant 0 : index
    %0 = vector.load %arg2[%c0, %c0_0] : memref<128x128xf32, #tpu.memory_space<vmem>>, vector<128x128xf32>
    %1 = arith.truncf %0 : vector<128x128xf32> to vector<128x128xbf16>
    %c0_1 = arith.constant 0 : index
    %c0_2 = arith.constant 0 : index
    %2 = vector.load %arg3[%c0_1, %c0_2] : memref<128x256xbf16, #tpu.memory_space<vmem>>, vector<128x256xbf16>
    %cst = arith.constant dense<0.000000e+00> : vector<128x256xf32>
    %3 = tpu.matmul %1, %2, %cst {dimension_numbers = #tpu.dot_dimension_numbers<[1], [0], [0], [1], [0, 0, 1, 1], [], []>} : vector<128x128xbf16>, vector<128x256xbf16>, vector<128x256xf32> -> vector<128x256xf32>
    %c0_3 = arith.constant 0 : index
    %c0_4 = arith.constant 0 : index
    %4 = vector.load %arg4[%c0_3, %c0_4] : memref<1x256xf32, #tpu.memory_space<vmem>>, vector<1x256xf32>
    %5 = vector.broadcast %4 : vector<1x256xf32> to vector<128x256xf32>
    %6 = arith.addf %3, %5 : vector<128x256xf32>
    %7 = vector.extract_strided_slice %6 {offsets = [0, 0], sizes = [128, 128], strides = [1, 1]} : vector<128x256xf32> to vector<128x128xf32>
    %8 = math.tanh %7 : vector<128x128xf32>
    %9 = vector.extract_strided_slice %6 {offsets = [0, 128], sizes = [128, 128], strides = [1, 1]} : vector<128x256xf32> to vector<128x128xf32>
    %cst_5 = arith.constant 0.00999999977 : f32
    %10 = vector.broadcast %cst_5 : f32 to vector<128x128xf32>
    %11 = arith.mulf %10, %9 : vector<128x128xf32>
    %12 = arith.maximumf %9, %11 : vector<128x128xf32>
    %13 = arith.mulf %8, %12 : vector<128x128xf32>
    %c0_6 = arith.constant 0 : index
    %c0_7 = arith.constant 0 : index
    %14 = vector.load %arg5[%c0_6, %c0_7] : memref<128x128xf32, #tpu.memory_space<vmem>>, vector<128x128xf32>
    tpu.vector_store %arg5[%c0_6, %c0_7], %13 {strides = array<i32>} : memref<128x128xf32, #tpu.memory_space<vmem>>, vector<128x128xf32>,
    return
  }
  func.func @transform_0(%arg0: i32, %arg1: i32) -> (i32, i32) {
    %c0_i32 = arith.constant 0 : i32
    %c0_i32_0 = arith.constant 0 : i32
    return %arg1, %c0_i32 : i32, i32
  }
  func.func @transform_1(%arg0: i32, %arg1: i32) -> (i32, i32) {
    %c0_i32 = arith.constant 0 : i32
    %c0_i32_0 = arith.constant 0 : i32
    return %c0_i32, %arg0 : i32, i32
  }
  func.func @transform_2(%arg0: i32, %arg1: i32) -> (i32, i32) {
    %c0_i32 = arith.constant 0 : i32
    %c0_i32_0 = arith.constant 0 : i32
    return %c0_i32, %arg0 : i32, i32
  }
  func.func @transform_3(%arg0: i32, %arg1: i32) -> (i32, i32) {
    %c0_i32 = arith.constant 0 : i32
    return %arg1, %arg0 : i32, i32
  }
}

</mosaic_0001>

<bundles_post_ra>
// kernel: tpu_custom_call.1
= control target key start
LH: loop header
LB: loop body
LE: loop exit
PB: predicated region body
PF: predicated region fallthrough
CT: control target
= control target key end

     0   :  { %8 = vsyncpa [#allocation3], 0  ;;  %s703_s0 = inlined_call_operand.hbm [shape: f32[16,128], index: 0, kind: input, shape index: {}]   ;;  %s704_s1 = inlined_call_operand.hbm [shape: bf16[128,256], index: 1, kind: input, shape index: {}]   ;;  %s705_s2 = inlined_call_operand.hbm [shape: f32[1,256], index: 2, kind: input, shape index: {}]   ;;  %s706_s3 = inlined_call_operand.hbm [shape: f32[16,128], index: 3, kind: output, shape index: {}]  }
   0x1   :  { %9 = vsyncpa [#allocation6], 0 }
   0x2   :  { %10 = vsyncpa [#allocation4], 0 }
   0x3   :  { %14 = vsyncadd [#allocation3], 1792  ;;  %s28_s14 = sshll.u32 %s704_s1, 4  ;;  %s620_s15 = smov [#allocation5]   ;;  %s29_s14 = int_to_ptr.hbm [resolvable:$true] %s28_s14 }
   0x4   :  { %s30_s16 = sshll.u32 %s620_s15, 4  ;;  %s15_s19 = sshll.u32 %s703_s0, 4  ;;  %s31_s16 = int_to_ptr.vmem [resolvable:$true] %s30_s16  ;;  %s16_s19 = int_to_ptr.hbm [resolvable:$true] %s15_s19 }
   0x5   :  { %s621_s20 = smov 128   ;;  %s622_s21 = smov 8  }
   0x6   :  { %36 = dma.hbm_to_vmem [thread:$0]  %s29_s14, 2048, %s31_s16, [#allocation6], %s621_s20, %s621_s20, %s622_s21  }
   0x7   :  { %s623_s22 = smov [#allocation2]   ;;  %s42_s1 = sshll.u32 %s705_s2, 4  ;;  %s43_s1 = int_to_ptr.hbm [resolvable:$true] %s42_s1 }
   0x8   :  { %s17_s23 = sshll.u32 %s623_s22, 4  ;;  %s624_s0 = smov [#allocation7]   ;;  %s18_s23 = int_to_ptr.vmem [resolvable:$true] %s17_s23 }
   0x9   :  { %23 = dma.hbm_to_vmem [thread:$0]  %s16_s19, 256, %s18_s23, [#allocation3], %s621_s20, %s621_s20, %s622_s21  }
   0xa   :  { %s44_s26 = sshll.u32 %s624_s0, 4  ;;  %s45_s26 = int_to_ptr.vmem [resolvable:$true] %s44_s26 }
   0xb   :  { %47 = dma.hbm_to_vmem [thread:$0]  %s43_s1, 32, %s45_s26, [#allocation6]  }
   0xc   :  { %614 = dma.done.wait [#allocation3], 2048  }
   0xd   :  { %615 = vsyncadd [#allocation3], 4294965248 }
   0xe   :  { %616 = dma.done.wait [#allocation6], 2080  }
   0xf   :  { %617 = vsyncadd [#allocation6], 4294965216  ;;  %v442_v0 = vld [vmem:[#allocation5 + $0x70] sm:$0xf]  ;;  %v463_v1 = vld [vmem:[#allocation5 + $0x74] sm:$0xf0] }
  0x10   :  { %v462_v2 = vld [vmem:[#allocation5 + $0x74] sm:$0xf]  ;;  %v443_v3 = vor.u32 %v463_v1, %v442_v0  ;;  %v444_v4 = vld [vmem:[#allocation5 + $0x78] sm:$0xf0]  ;;  %v434_v5 = vld [vmem:[#allocation5 + $0x60] sm:$0xf] }
  0x11   :  { %v461_v6 = vld [vmem:[#allocation5 + $0x64] sm:$0xf0]  ;;  %v447_v7 = vor.u32 %v462_v2, %v444_v4  ;;  %v460_v8 = vld [vmem:[#allocation5 + $0x64] sm:$0xf]  ;;  %v436_v9 = vld [vmem:[#allocation5 + $0x68] sm:$0xf0] }
  0x12   :  { %186 = vmatpush.bf16.msra.mxu0 %v443_v3  ;;  %464 = vmatpush.bf16.msra.mxu2 %v443_v3  ;;  %v435_v10 = vor.u32 %v461_v6, %v434_v5  ;;  %v439_v11 = vor.u32 %v460_v8, %v436_v9  ;;  %v426_v12 = vld [vmem:[#allocation5 + $0x50] sm:$0xf]  ;;  %v459_v13 = vld [vmem:[#allocation5 + $0x54] sm:$0xf0]  ;;  %v458_v14 = vld [vmem:[#allocation5 + $0x54] sm:$0xf] }
  0x13   :  { %235 = vmatpush.bf16.msra.mxu1 %v447_v7  ;;  %472 = vmatpush.bf16.msra.mxu3 %v447_v7  ;;  %v428_v15 = vld [vmem:[#allocation5 + $0x58] sm:$0xf0]  ;;  %v427_v16 = vor.u32 %v459_v13, %v426_v12  ;;  %v418_v18 = vld [vmem:[#allocation5 + $0x40] sm:$0xf]  ;;  %v457_v19 = vld [vmem:[#allocation5 + $0x44] sm:$0xf0] }
  0x14   :  { %v431_v17 = vor.u32 %v458_v14, %v428_v15  ;;  %v456_v20 = vld [vmem:[#allocation5 + $0x44] sm:$0xf]  ;;  %v420_v21 = vld [vmem:[#allocation5 + $0x48] sm:$0xf0]  ;;  %v419_v22 = vor.u32 %v457_v19, %v418_v18  ;;  %v410_v24 = vld [vmem:[#allocation5 + $0x30] sm:$0xf] }
  0x15   :  { %v423_v23 = vor.u32 %v456_v20, %v420_v21  ;;  %v455_v25 = vld [vmem:[#allocation5 + $0x34] sm:$0xf0]  ;;  %v454_v26 = vld [vmem:[#allocation5 + $0x34] sm:$0xf]  ;;  %v412_v27 = vld [vmem:[#allocation5 + $0x38] sm:$0xf0] }
  0x16   :  { %187 = vmatpush.bf16.msra.mxu0 %v435_v10  ;;  %465 = vmatpush.bf16.msra.mxu2 %v435_v10  ;;  %v411_v28 = vor.u32 %v455_v25, %v410_v24  ;;  %v415_v29 = vor.u32 %v454_v26, %v412_v27  ;;  %v402_v30 = vld [vmem:[#allocation5 + $0x20] sm:$0xf]  ;;  %v453_v31 = vld [vmem:[#allocation5 + $0x24] sm:$0xf0]  ;;  %v452_v32 = vld [vmem:[#allocation5 + $0x24] sm:$0xf] }
  0x17   :  { %236 = vmatpush.bf16.msra.mxu1 %v439_v11  ;;  %473 = vmatpush.bf16.msra.mxu3 %v439_v11  ;;  %v404_v33 = vld [vmem:[#allocation5 + $0x28] sm:$0xf0]  ;;  %v403_v34 = vor.u32 %v453_v31, %v402_v30  ;;  %v394_v36 = vld [vmem:[#allocation5 + $0x10] sm:$0xf]  ;;  %v451_v37 = vld [vmem:[#allocation5 + $0x14] sm:$0xf0] }
  0x18   :  { %v407_v35 = vor.u32 %v452_v32, %v404_v33  ;;  %v450_v38 = vld [vmem:[#allocation5 + $0x14] sm:$0xf]  ;;  %v396_v39 = vld [vmem:[#allocation5 + $0x18] sm:$0xf0]  ;;  %v395_v40 = vor.u32 %v451_v37, %v394_v36  ;;  %v386_v42 = vld [vmem:[#allocation5] sm:$0xf] }
  0x19   :  { %v399_v41 = vor.u32 %v450_v38, %v396_v39  ;;  %v449_v43 = vld [vmem:[#allocation5 + $0x4] sm:$0xf0]  ;;  %v448_v44 = vld [vmem:[#allocation5 + $0x4] sm:$0xf]  ;;  %v388_v45 = vld [vmem:[#allocation5 + $0x8] sm:$0xf0] }
  0x1a   :  { %188 = vmatpush.bf16.msra.mxu0 %v427_v16  ;;  %466 = vmatpush.bf16.msra.mxu2 %v427_v16  ;;  %v60_v46 = vld [vmem:[#allocation2] sm:$0xff]  ;;  %v387_v47 = vor.u32 %v449_v43, %v386_v42  ;;  %v61_v48 = vld [vmem:[#allocation2 + $0x8] sm:$0xff]  ;;  %v391_v51 = vor.u32 %v448_v44, %v388_v45  ;;  %v62_v54 = vld [vmem:[#allocation2 + $0x10] sm:$0xff] }
  0x1b   :  { %237 = vmatpush.bf16.msra.mxu1 %v431_v17  ;;  %474 = vmatpush.bf16.msra.mxu3 %v431_v17  ;;  %v68_v49 = vld [vmem:[#allocation2 + $0x40] sm:$0xff]  ;;  %v69_v50 = vld [vmem:[#allocation2 + $0x48] sm:$0xff]  ;;  %v76_v52 = vpack.c.bf16 %v61_v48, %v60_v46  ;;  %v63_v55 = vld [vmem:[#allocation2 + $0x18] sm:$0xff] }
  0x1c   :  { %v80_v53 = vpack.c.bf16 %v69_v50, %v68_v49  ;;  %v70_v56 = vld [vmem:[#allocation2 + $0x50] sm:$0xff]  ;;  %v71_v57 = vld [vmem:[#allocation2 + $0x58] sm:$0xff]  ;;  %v77_v58 = vpack.c.bf16 %v63_v55, %v62_v54  ;;  %v64_v60 = vld [vmem:[#allocation2 + $0x20] sm:$0xff] }
  0x1d   :  { %v81_v59 = vpack.c.bf16 %v71_v57, %v70_v56  ;;  %v65_v61 = vld [vmem:[#allocation2 + $0x28] sm:$0xff]  ;;  %v72_v62 = vld [vmem:[#allocation2 + $0x60] sm:$0xff]  ;;  %v66_v2 = vld [vmem:[#allocation2 + $0x30] sm:$0xff] }
  0x1e   :  { %189 = vmatpush.bf16.msra.mxu0 %v419_v22  ;;  %467 = vmatpush.bf16.msra.mxu2 %v419_v22  ;;  %v73_v63 = vld [vmem:[#allocation2 + $0x68] sm:$0xff]  ;;  %v78_v0 = vpack.c.bf16 %v65_v61, %v64_v60  ;;  %v67_v3 = vld [vmem:[#allocation2 + $0x38] sm:$0xff]  ;;  %v74_v4 = vld [vmem:[#allocation2 + $0x70] sm:$0xff] }
  0x1f   :  { %238 = vmatpush.bf16.msra.mxu1 %v423_v23  ;;  %475 = vmatpush.bf16.msra.mxu3 %v423_v23  ;;  %v82_v1 = vpack.c.bf16 %v73_v63, %v72_v62  ;;  %v75_v5 = vld [vmem:[#allocation2 + $0x78] sm:$0xff]  ;;  %v79_v6 = vpack.c.bf16 %v67_v3, %v66_v2  ;;  %v100_v8 = vld [vmem:[#allocation7] sm:$0x3] }
  0x20   :  { %v83_v7 = vpack.c.bf16 %v75_v5, %v74_v4  ;;  %v661_v9 = vperm.slane %v100_v8, 0  ;;  %v663_v10 = vperm.slane %v100_v8, 1 }
  0x22   :  { %190 = vmatpush.bf16.msra.mxu0 %v411_v28  ;;  %468 = vmatpush.bf16.msra.mxu2 %v411_v28 }
  0x23   :  { %239 = vmatpush.bf16.msra.mxu1 %v415_v29  ;;  %476 = vmatpush.bf16.msra.mxu3 %v415_v29 }
  0x26   :  { %191 = vmatpush.bf16.msra.mxu0 %v403_v34  ;;  %469 = vmatpush.bf16.msra.mxu2 %v403_v34 }
  0x27   :  { %240 = vmatpush.bf16.msra.mxu1 %v407_v35  ;;  %477 = vmatpush.bf16.msra.mxu3 %v407_v35 }
  0x2a   :  { %192 = vmatpush.bf16.msra.mxu0 %v395_v40  ;;  %470 = vmatpush.bf16.msra.mxu2 %v395_v40 }
  0x2b   :  { %241 = vmatpush.bf16.msra.mxu1 %v399_v41  ;;  %478 = vmatpush.bf16.msra.mxu3 %v399_v41 }
  0x2e   :  { %193 = vmatpush.bf16.msra.mxu0 %v387_v47  ;;  %471 = vmatpush.bf16.msra.mxu2 %v387_v47 }
  0x2f   :  { %242 = vmatpush.bf16.msra.mxu1 %v391_v51  ;;  %479 = vmatpush.bf16.msra.mxu3 %v391_v51 }
  0x31   :  { %194 = vmatmul.bf16.vlgmr.msra.gmra.mxu0 %v76_v52  ;;  %214 = vmatmul.bf16.vlgmr.msra.gmra.mxu2 %v80_v53 }
  0x32   :  { %243 = vmatmul.bf16.vlgmr.msra.gmra.mxu1 %v76_v52  ;;  %263 = vmatmul.bf16.vlgmr.msra.gmra.mxu3 %v80_v53 }
  0x41   :  { %199 = vmatmul.bf16.gmra.mxu0 %v77_v58  ;;  %219 = vmatmul.bf16.gmra.mxu2 %v81_v59 }
  0x42   :  { %248 = vmatmul.bf16.gmra.mxu1 %v77_v58  ;;  %268 = vmatmul.bf16.gmra.mxu3 %v81_v59 }
  0x51   :  { %204 = vmatmul.bf16.gmra.mxu0 %v78_v0  ;;  %224 = vmatmul.bf16.gmra.mxu2 %v82_v1 }
  0x52   :  { %253 = vmatmul.bf16.gmra.mxu1 %v78_v0  ;;  %273 = vmatmul.bf16.gmra.mxu3 %v82_v1 }
  0x61   :  { %209 = vmatmul.bf16.gmra.mxu0 %v79_v6  ;;  %229 = vmatmul.bf16.gmra.mxu2 %v83_v7 }
  0x62   :  { %258 = vmatmul.bf16.gmra.mxu1 %v79_v6  ;;  %278 = vmatmul.bf16.gmra.mxu3 %v83_v7 }
  0xae   :  { %v195_v11 = vpop.f32.mrf.mxu0 }
  0xaf   :  { %v196_v12 = vadd.f32 %v195_v11, %v661_v9  ;;  %v244_v13 = vpop.f32.mrf.mxu1 }
  0xb0   :  { %v245_v14 = vadd.f32 %v244_v13, %v663_v10 }
  0xb1   :  { %486 = vtanh.f32 %v196_v12 }
  0xb2   :  { %v300_v15 = vmul.f32 0.01, %v245_v14 }
  0xb4   :  { %v316_v16 = vmax.f32 %v245_v14, %v300_v15  ;;  %v215_v17 = vpop.f32.mrf.mxu2 }
  0xb5   :  { %v216_v18 = vadd.f32 %v215_v17, %v661_v9  ;;  %v264_v19 = vpop.f32.mrf.mxu3 }
  0xb6   :  { %v265_v20 = vadd.f32 %v264_v19, %v663_v10  ;;  %v197_v21 = vpop.f32.mrf.mxu0 }
  0xb7   :  { %v487_v22 = vpop.eup %486  ;;  %488 = vtanh.f32 %v216_v18  ;;  %v198_v23 = vadd.f32 %v197_v21, %v661_v9  ;;  %v246_v24 = vpop.f32.mrf.mxu1 }
  0xb8   :  { %v332_v25 = vmul.f32 %v487_v22, %v316_v16  ;;  %v308_v26 = vmul.f32 0.01, %v265_v20  ;;  %v247_v27 = vadd.f32 %v246_v24, %v663_v10 }
  0xb9   :  { %490 = vtanh.f32 %v198_v23 }
  0xba   :  { %348 = vst [vmem:[#allocation8] sm:$0xff] %v332_v25  ;;  %v301_v28 = vmul.f32 0.01, %v247_v27  ;;  %v324_v29 = vmax.f32 %v265_v20, %v308_v26 }
  0xbc   :  { %v217_v30 = vpop.f32.mrf.mxu2  ;;  %v317_v35 = vmax.f32 %v247_v27, %v301_v28 }
  0xbd   :  { %v489_v31 = vpop.eup %488  ;;  %v218_v32 = vadd.f32 %v217_v30, %v661_v9  ;;  %v266_v33 = vpop.f32.mrf.mxu3 }
  0xbe   :  { %v340_v34 = vmul.f32 %v489_v31, %v324_v29  ;;  %v267_v36 = vadd.f32 %v266_v33, %v663_v10  ;;  %v200_v37 = vpop.f32.mrf.mxu0 }
  0xbf   :  { %v491_v38 = vpop.eup %490  ;;  %492 = vtanh.f32 %v218_v32  ;;  %v201_v39 = vadd.f32 %v200_v37, %v661_v9  ;;  %v249_v40 = vpop.f32.mrf.mxu1 }
  0xc0   :  { %356 = vst [vmem:[#allocation8 + $0x40] sm:$0xff] %v340_v34  ;;  %v333_v41 = vmul.f32 %v491_v38, %v317_v35  ;;  %v309_v42 = vmul.f32 0.01, %v267_v36  ;;  %v250_v43 = vadd.f32 %v249_v40, %v663_v10 }
  0xc1   :  { %494 = vtanh.f32 %v201_v39 }
  0xc2   :  { %349 = vst [vmem:[#allocation8 + $0x8] sm:$0xff] %v333_v41  ;;  %v302_v44 = vmul.f32 0.01, %v250_v43  ;;  %v325_v45 = vmax.f32 %v267_v36, %v309_v42 }
  0xc4   :  { %v318_v46 = vmax.f32 %v250_v43, %v302_v44  ;;  %v220_v47 = vpop.f32.mrf.mxu2 }
  0xc5   :  { %v493_v48 = vpop.eup %492  ;;  %v221_v49 = vadd.f32 %v220_v47, %v661_v9  ;;  %v269_v50 = vpop.f32.mrf.mxu3 }
  0xc6   :  { %v341_v51 = vmul.f32 %v493_v48, %v325_v45  ;;  %v270_v52 = vadd.f32 %v269_v50, %v663_v10  ;;  %v202_v53 = vpop.f32.mrf.mxu0 }
  0xc7   :  { %v495_v54 = vpop.eup %494  ;;  %496 = vtanh.f32 %v221_v49  ;;  %v203_v55 = vadd.f32 %v202_v53, %v661_v9  ;;  %v251_v56 = vpop.f32.mrf.mxu1 }
  0xc8   :  { %357 = vst [vmem:[#allocation8 + $0x48] sm:$0xff] %v341_v51  ;;  %v334_v57 = vmul.f32 %v495_v54, %v318_v46  ;;  %v310_v58 = vmul.f32 0.01, %v270_v52  ;;  %v252_v59 = vadd.f32 %v251_v56, %v663_v10 }
  0xc9   :  { %498 = vtanh.f32 %v203_v55 }
  0xca   :  { %350 = vst [vmem:[#allocation8 + $0x10] sm:$0xff] %v334_v57  ;;  %v303_v60 = vmul.f32 0.01, %v252_v59  ;;  %v326_v61 = vmax.f32 %v270_v52, %v310_v58 }
  0xcc   :  { %v222_v62 = vpop.f32.mrf.mxu2  ;;  %v319_v3 = vmax.f32 %v252_v59, %v303_v60 }
  0xcd   :  { %v497_v63 = vpop.eup %496  ;;  %v223_v0 = vadd.f32 %v222_v62, %v661_v9  ;;  %v271_v1 = vpop.f32.mrf.mxu3 }
  0xce   :  { %v342_v2 = vmul.f32 %v497_v63, %v326_v61  ;;  %v272_v4 = vadd.f32 %v271_v1, %v663_v10  ;;  %v205_v5 = vpop.f32.mrf.mxu0 }
  0xcf   :  { %v499_v6 = vpop.eup %498  ;;  %500 = vtanh.f32 %v223_v0  ;;  %v206_v7 = vadd.f32 %v205_v5, %v661_v9  ;;  %v254_v8 = vpop.f32.mrf.mxu1 }
  0xd0   :  { %358 = vst [vmem:[#allocation8 + $0x50] sm:$0xff] %v342_v2  ;;  %v335_v11 = vmul.f32 %v499_v6, %v319_v3  ;;  %v311_v12 = vmul.f32 0.01, %v272_v4  ;;  %v255_v13 = vadd.f32 %v254_v8, %v663_v10 }
  0xd1   :  { %502 = vtanh.f32 %v206_v7 }
  0xd2   :  { %351 = vst [vmem:[#allocation8 + $0x18] sm:$0xff] %v335_v11  ;;  %v304_v14 = vmul.f32 0.01, %v255_v13  ;;  %v327_v15 = vmax.f32 %v272_v4, %v311_v12 }
  0xd4   :  { %v320_v16 = vmax.f32 %v255_v13, %v304_v14  ;;  %v225_v17 = vpop.f32.mrf.mxu2 }
  0xd5   :  { %v501_v18 = vpop.eup %500  ;;  %v226_v19 = vadd.f32 %v225_v17, %v661_v9  ;;  %v274_v20 = vpop.f32.mrf.mxu3 }
  0xd6   :  { %v343_v21 = vmul.f32 %v501_v18, %v327_v15  ;;  %v275_v22 = vadd.f32 %v274_v20, %v663_v10  ;;  %v207_v23 = vpop.f32.mrf.mxu0 }
  0xd7   :  { %v503_v24 = vpop.eup %502  ;;  %504 = vtanh.f32 %v226_v19  ;;  %v208_v25 = vadd.f32 %v207_v23, %v661_v9  ;;  %v256_v26 = vpop.f32.mrf.mxu1 }
  0xd8   :  { %359 = vst [vmem:[#allocation8 + $0x58] sm:$0xff] %v343_v21  ;;  %v336_v27 = vmul.f32 %v503_v24, %v320_v16  ;;  %v312_v28 = vmul.f32 0.01, %v275_v22  ;;  %v257_v29 = vadd.f32 %v256_v26, %v663_v10 }
  0xd9   :  { %506 = vtanh.f32 %v208_v25 }
  0xda   :  { %352 = vst [vmem:[#allocation8 + $0x20] sm:$0xff] %v336_v27  ;;  %v305_v30 = vmul.f32 0.01, %v257_v29  ;;  %v328_v31 = vmax.f32 %v275_v22, %v312_v28 }
  0xdc   :  { %v227_v32 = vpop.f32.mrf.mxu2  ;;  %v321_v37 = vmax.f32 %v257_v29, %v305_v30 }
  0xdd   :  { %v505_v33 = vpop.eup %504  ;;  %v228_v34 = vadd.f32 %v227_v32, %v661_v9  ;;  %v276_v35 = vpop.f32.mrf.mxu3 }
  0xde   :  { %v344_v36 = vmul.f32 %v505_v33, %v328_v31  ;;  %v277_v38 = vadd.f32 %v276_v35, %v663_v10  ;;  %v210_v39 = vpop.f32.mrf.mxu0 }
  0xdf   :  { %v507_v40 = vpop.eup %506  ;;  %508 = vtanh.f32 %v228_v34  ;;  %v211_v41 = vadd.f32 %v210_v39, %v661_v9  ;;  %v259_v42 = vpop.f32.mrf.mxu1 }
  0xe0   :  { %360 = vst [vmem:[#allocation8 + $0x60] sm:$0xff] %v344_v36  ;;  %v337_v43 = vmul.f32 %v507_v40, %v321_v37  ;;  %v313_v44 = vmul.f32 0.01, %v277_v38  ;;  %v260_v45 = vadd.f32 %v259_v42, %v663_v10 }
  0xe1   :  { %510 = vtanh.f32 %v211_v41 }
  0xe2   :  { %353 = vst [vmem:[#allocation8 + $0x28] sm:$0xff] %v337_v43  ;;  %v306_v46 = vmul.f32 0.01, %v260_v45  ;;  %v329_v47 = vmax.f32 %v277_v38, %v313_v44 }
  0xe4   :  { %v322_v48 = vmax.f32 %v260_v45, %v306_v46  ;;  %v230_v49 = vpop.f32.mrf.mxu2 }
  0xe5   :  { %v509_v50 = vpop.eup %508  ;;  %v231_v51 = vadd.f32 %v230_v49, %v661_v9  ;;  %v279_v52 = vpop.f32.mrf.mxu3 }
  0xe6   :  { %v345_v53 = vmul.f32 %v509_v50, %v329_v47  ;;  %v280_v54 = vadd.f32 %v279_v52, %v663_v10  ;;  %v212_v55 = vpop.f32.mrf.mxu0 }
  0xe7   :  { %v511_v56 = vpop.eup %510  ;;  %512 = vtanh.f32 %v231_v51  ;;  %v213_v57 = vadd.f32 %v212_v55, %v661_v9  ;;  %v261_v58 = vpop.f32.mrf.mxu1 }
  0xe8   :  { %361 = vst [vmem:[#allocation8 + $0x68] sm:$0xff] %v345_v53  ;;  %v338_v59 = vmul.f32 %v511_v56, %v322_v48  ;;  %v314_v60 = vmul.f32 0.01, %v280_v54  ;;  %v262_v61 = vadd.f32 %v261_v58, %v663_v10 }
  0xe9   :  { %514 = vtanh.f32 %v213_v57 }
  0xea   :  { %354 = vst [vmem:[#allocation8 + $0x30] sm:$0xff] %v338_v59  ;;  %v307_v62 = vmul.f32 0.01, %v262_v61  ;;  %v330_v63 = vmax.f32 %v280_v54, %v314_v60 }
  0xec   :  { %v232_v0 = vpop.f32.mrf.mxu2  ;;  %v323_v5 = vmax.f32 %v262_v61, %v307_v62 }
  0xed   :  { %v513_v1 = vpop.eup %512  ;;  %v233_v2 = vadd.f32 %v232_v0, %v661_v9  ;;  %v281_v3 = vpop.f32.mrf.mxu3 }
  0xee   :  { %v346_v4 = vmul.f32 %v513_v1, %v330_v63  ;;  %v282_v6 = vadd.f32 %v281_v3, %v663_v10 }
  0xef   :  { %v515_v7 = vpop.eup %514  ;;  %516 = vtanh.f32 %v233_v2 }
  0xf0   :  { %362 = vst [vmem:[#allocation8 + $0x70] sm:$0xff] %v346_v4  ;;  %v339_v8 = vmul.f32 %v515_v7, %v323_v5  ;;  %v315_v11 = vmul.f32 0.01, %v282_v6 }
  0xf2   :  { %355 = vst [vmem:[#allocation8 + $0x38] sm:$0xff] %v339_v8  ;;  %v331_v12 = vmax.f32 %v282_v6, %v315_v11 }
  0xf5   :  { %v517_v13 = vpop.eup %516 }
  0xf6   :  { %v347_v14 = vmul.f32 %v517_v13, %v331_v12 }
  0xf8   :  { %363 = vst [vmem:[#allocation8 + $0x78] sm:$0xff] %v347_v14 }
  0xf9   :  { %367 = vsyncadd [#allocation4], 1792  ;;  %s370_s28 = sshll.u32 %s706_s3, 4  ;;  %s625_s29 = smov [#allocation8]   ;;  %s371_s28 = int_to_ptr.hbm [resolvable:$true] %s370_s28 }
  0xfa   :  { %s368_s30 = sshll.u32 %s625_s29, 4  ;;  %s369_s30 = int_to_ptr.vmem [resolvable:$true] %s368_s30 }
  0xfb   :  { %376 = dma.vmem_to_hbm [thread:$0]  %s369_s30, 256, %s371_s28, [#allocation4], %s621_s20, %s621_s20, %s622_s21  }
  0xfc   :  { %618 = dma.done.wait [#allocation4], 2048  }
  0xfd   :  { %619 = vsyncadd [#allocation4], 4294965248 }
  0xfe   :  { %381 = vsyncpa [#allocation3], 1 }
  0xff   :  { %382 = vsyncpa [#allocation6], 1 }
 0x100   :  { %383 = vsyncpa [#allocation4], 1 }

</bundles_post_ra>
